<compile_context>
chip_gen: v7x
topology: tpu7x:2x2x1
jax: 0.10.0
libtpu: 0.0.40
codegen_flags: <defaults>
</compile_context>

<pallas_src>
import functools

import jax
import jax.numpy as jnp
from jax.experimental import pallas as pl
from jax.experimental.pallas import tpu as pltpu


def _interp_kernel(xn_ref, yn_ref, xin_ref, out_ref, *, n_node):
    x_node = xn_ref[...]                                   # (N, 1)
    x_in = xin_ref[...]                                    # (1, TM) lane-major
    tm = x_in.shape[1]

    # clamp_min(x_node[0]) / clamp_max(x_node[-1])  ('fixed' boundary)
    lo = x_node[0:1, :]                                    # (1, 1)
    hi = x_node[n_node - 1:n_node, :]                      # (1, 1)
    x_in = jnp.minimum(jnp.maximum(x_in, lo), hi)

    # torch.searchsorted(x_node, x_in, side='left') == #nodes strictly < x_in.
    # (N, TM): N on sublanes, TM on lanes -> full vregs.
    less = (x_node < x_in).astype(jnp.float32)             # (N, TM)
    inds_1 = jnp.sum(less, axis=0, keepdims=True).astype(jnp.int32)   # (1, TM)
    # After clamping, inds_1 <= n_node-1 always, so the reference's
    # `inds_1[inds_1 > n_bin] = n_bin` is dead and dropped.
    inds_0 = inds_1 - 1
    inds_0 = jnp.where(inds_0 < 0, 1, inds_0)              # inds_0[inds_0 < 0] = 1

    # One-hot selectors over the node axis (sublanes).
    iota = jax.lax.broadcasted_iota(jnp.int32, (n_node, tm), 0)        # (N, TM)
    oh0 = (iota == inds_0).astype(jnp.float32)             # (N, TM)
    oh1 = (iota == inds_1).astype(jnp.float32)             # (N, TM)

    xn_0 = jnp.sum(oh0 * x_node, axis=0, keepdims=True)    # (1, TM)
    xn_1 = jnp.sum(oh1 * x_node, axis=0, keepdims=True)    # (1, TM)

    # x_local = (x_in - xn_0) / (xn_1 - xn_0): EUP approx reciprocal + one
    # Newton step (divide kept off the VALU path, ~f32 accuracy).
    d = xn_1 - xn_0
    r = pl.reciprocal(d, approx=True)
    r = r * (2.0 - d * r)
    x_local = (x_in - xn_0) * r                            # (1, TM)

    # Fold the linear blend into the selectors -> single MXU matmul,
    # contracting the node axis of BOTH operands so the result comes out
    # directly in (TM, X): no transpose anywhere (kernel or wrapper).
    w_t = oh0 * (1.0 - x_local) + oh1 * x_local            # (N, TM)
    out_ref[...] = jax.lax.dot_general(
        w_t, yn_ref[...],
        dimension_numbers=(((0,), (0,)), ((), ())),        # (N,TM)x(N,X)->(TM,X)
        preferred_element_type=jnp.float32)


def linear_interpolation(x_node, y_node, x_in, *, tm=None, x_block_max=512,
                         vmem_budget_bytes=20 * 1024 * 1024):
    """Pallas equivalent of LinearInterpolation(x_node, y_node).forward(x_in)."""
    x_node = jnp.asarray(x_node, jnp.float32)
    y_node = jnp.asarray(y_node, jnp.float32)
    n_node = x_node.shape[0]
    n_feat = y_node.shape[1]
    assert n_node >= 2, "need at least two interpolation nodes"

    x_flat = jnp.ravel(x_in).astype(jnp.float32)
    m = x_flat.shape[0]

    # --- Feature (X) tiling: tile only when X is large and 128-divisible, so
    # y_node and the output block are never forced fully resident (v7x 64 MiB).
    x_block_max = max(128, (int(x_block_max) // 128) * 128)
    if n_feat % 128 == 0 and n_feat > x_block_max:
        x_block = x_block_max
        while n_feat % x_block != 0:
            x_block -= 128
    else:
        x_block = n_feat
    num_x_tiles = n_feat // x_block

    # --- Query (M) tile: largest multiple of 128 fitting the VMEM budget.
    if tm is None:
        per_lane = (2 * 4                      # x_in block, double-buffered
                    + 2 * 4 * x_block          # out block, double-buffered
                    + 8 * 4 * n_node)          # ~(N, tm) f32 in-kernel temporaries
        fixed = 4 * n_node + 4 * n_node * x_block
        tm = max(128, (vmem_budget_bytes - fixed) // per_lane)
    tm = max(128, (int(tm) // 128) * 128)
    tm = min(tm, 8192)

    m_pad_min = ((m + 127) // 128) * 128
    tm = min(tm, m_pad_min)                    # never over-pad tiny inputs
    # Keep >= 2 grid steps when possible so v7x's 2 TensorCores both get work.
    if num_x_tiles == 1 and tm >= m_pad_min and m_pad_min >= 256:
        tm = ((m_pad_min // 2 + 127) // 128) * 128
    m_pad = ((m + tm - 1) // tm) * tm

    # Pad with a literal 0.0 (padded queries are clamped in-kernel and the
    # padded output rows are sliced off; no host sync under jit).
    x_row = jnp.pad(x_flat, (0, m_pad - m)).reshape(1, m_pad)
    x_node_col = x_node.reshape(n_node, 1)

    kernel = functools.partial(_interp_kernel, n_node=n_node)
    grid = (m_pad // tm, num_x_tiles)

    # Explicit scoped-VMEM limit derived from the block sizes (+50% headroom).
    est = (2 * 4 * tm                          # x_in
           + 4 * n_node                        # x_node
           + 2 * 4 * n_node * x_block          # y_node
           + 2 * 4 * tm * x_block              # out
           + 8 * 4 * n_node * tm)              # (N, tm) temporaries
    vmem_limit = int(min(max(int(est * 1.5), 32 * 1024 * 1024), 64 * 1024 * 1024))

    def _build(const_mode):
        in_specs = [
            # Constant-index inputs: single-buffer (they are never re-DMA'd).
            pl.BlockSpec((n_node, 1), lambda i, j: (0, 0),
                         pipeline_mode=const_mode),
            pl.BlockSpec((n_node, x_block), lambda i, j: (0, j),
                         pipeline_mode=(const_mode if num_x_tiles == 1 else None)),
            pl.BlockSpec((1, tm), lambda i, j: (0, i)),
        ]
        out_spec = pl.BlockSpec((tm, x_block), lambda i, j: (i, j))
        return pl.pallas_call(
            kernel,
            out_shape=jax.ShapeDtypeStruct((m_pad, n_feat), jnp.float32),
            grid_spec=pltpu.PrefetchScalarGridSpec(
                num_scalar_prefetch=0,
                grid=grid,
                in_specs=in_specs,
                out_specs=out_spec,
            ),
            compiler_params=pltpu.CompilerParams(
                dimension_semantics=("parallel", "parallel"),
                vmem_limit_bytes=vmem_limit),
        )

    try:
        out = _build(pl.Buffered(1))(x_node_col, y_node, x_row)
    except Exception:
        # Fallback if single-buffering via pl.Buffered(1) is not accepted.
        out = _build(None)(x_node_col, y_node, x_row)

    # Output is already (M_pad, X): just strip the query padding.
    return out[:m, :]


def _reference(x_node, y_node, x_in):
    """Pure-JAX reference mirroring the PyTorch forward exactly."""
    x_flat = jnp.ravel(x_in)
    x_flat = jnp.clip(x_flat, x_node[0], x_node[-1])
    n_bin = x_node.shape[0] - 1
    inds_1 = jnp.searchsorted(x_node, x_flat, side='left')
    inds_1 = jnp.where(inds_1 > n_bin, n_bin, inds_1)
    inds_0 = inds_1 - 1
    inds_0 = jnp.where(inds_0 < 0, 1, inds_0)
    xn_0 = x_node[inds_0]
    xn_1 = x_node[inds_1]
    x_local = ((x_flat - xn_0) / (xn_1 - xn_0))[:, None]
    yn_0 = y_node[inds_0]
    yn_1 = y_node[inds_1]
    return yn_0 * (1 - x_local) + yn_1 * x_local


if __name__ == "__main__":
    key = jax.random.PRNGKey(0)
    k1, k2, k3 = jax.random.split(key, 3)

    N_NODE = 8     # number of x/y nodes
    N_FEAT = 32    # feature width X of y_node
    M_IN = 300     # number of query points (exercises padding + multi-tile grid)

    # Deterministic "parameters" (the module's buffers): sorted x grid + y values.
    x_node = jnp.sort(jax.random.uniform(k1, (N_NODE,), jnp.float32,
                                         minval=-1.0, maxval=1.0))
    y_node = jax.random.normal(k2, (N_NODE, N_FEAT), jnp.float32)

    # Query points, some intentionally outside [x_node[0], x_node[-1]]
    # to exercise the 'fixed' boundary (clamp) path.
    x_in = jax.random.uniform(k3, (M_IN, 1), jnp.float32, minval=-1.5, maxval=1.5)

    y_out = linear_interpolation(x_node, y_node, x_in)
    y_out = jax.block_until_ready(y_out)

    y_ref = _reference(x_node, y_node, x_in)
    assert y_out.shape == (M_IN, N_FEAT)
    assert jnp.allclose(y_out, y_ref, atol=1e-4, rtol=1e-4), "mismatch vs reference"

    print("KERNEL_OK")
</pallas_src>

<mosaic_0001>
module attributes {stable_mosaic.version = 11 : i64} {
  func.func @_interp_kernel(%arg0: i32, %arg1: i32, %arg2: memref<8x1xf32, #tpu.memory_space<vmem>>, %arg3: memref<8x32xf32, #tpu.memory_space<vmem>>, %arg4: memref<1x256xf32, #tpu.memory_space<vmem>>, %arg5: memref<256x32xf32, #tpu.memory_space<vmem>>) attributes {dimension_semantics = [#tpu.dimension_semantics<parallel>, #tpu.dimension_semantics<parallel>], iteration_bounds = array<i64: 2, 1>, scalar_prefetch = 0 : i64, scratch_operands = 0 : i64, tpu.core_type = #tpu.core_type<tc>, window_params = [{pipeline_mode = #tpu.pipeline_mode<synchronous>, transform_indices = @transform_0, window_bounds = array<i64: 8, 1>}, {pipeline_mode = #tpu.pipeline_mode<synchronous>, transform_indices = @transform_1, window_bounds = array<i64: 8, 32>}, {transform_indices = @transform_2, window_bounds = array<i64: 1, 256>}, {transform_indices = @transform_3, window_bounds = array<i64: 256, 32>}]} {
    %c0 = arith.constant 0 : index
    %c0_0 = arith.constant 0 : index
    %0 = vector.load %arg2[%c0, %c0_0] : memref<8x1xf32, #tpu.memory_space<vmem>>, vector<8x1xf32>
    %c0_1 = arith.constant 0 : index
    %c0_2 = arith.constant 0 : index
    %1 = vector.load %arg4[%c0_1, %c0_2] : memref<1x256xf32, #tpu.memory_space<vmem>>, vector<1x256xf32>
    %2 = vector.extract_strided_slice %0 {offsets = [0, 0], sizes = [1, 1], strides = [1, 1]} : vector<8x1xf32> to vector<1x1xf32>
    %3 = vector.extract_strided_slice %0 {offsets = [7, 0], sizes = [1, 1], strides = [1, 1]} : vector<8x1xf32> to vector<1x1xf32>
    %4 = vector.broadcast %2 : vector<1x1xf32> to vector<1x256xf32>
    %5 = arith.maximumf %1, %4 : vector<1x256xf32>
    %6 = vector.broadcast %3 : vector<1x1xf32> to vector<1x256xf32>
    %7 = arith.minimumf %5, %6 : vector<1x256xf32>
    %8 = vector.broadcast %0 : vector<8x1xf32> to vector<8x256xf32>
    %9 = vector.broadcast %7 : vector<1x256xf32> to vector<8x256xf32>
    %10 = arith.cmpf olt, %8, %9 : vector<8x256xf32>
    %11 = arith.extui %10 : vector<8x256xi1> to vector<8x256xi32>
    %12 = arith.sitofp %11 : vector<8x256xi32> to vector<8x256xf32>
    %cst = arith.constant dense<0.000000e+00> : vector<256xf32>
    %13 = vector.multi_reduction <add>, %12, %cst [0] : vector<8x256xf32> to vector<256xf32>
    %14 = vector.shape_cast %13 : vector<256xf32> to vector<1x256xf32>
    %15 = arith.fptosi %14 : vector<1x256xf32> to vector<1x256xi32>
    %c1_i32 = arith.constant 1 : i32
    %16 = vector.broadcast %c1_i32 : i32 to vector<1x256xi32>
    %17 = arith.subi %15, %16 : vector<1x256xi32>
    %c0_i32 = arith.constant 0 : i32
    %18 = vector.broadcast %c0_i32 : i32 to vector<1x256xi32>
    %19 = arith.cmpi slt, %17, %18 : vector<1x256xi32>
    %c1_i32_3 = arith.constant 1 : i32
    %20 = vector.broadcast %c1_i32_3 : i32 to vector<1x256xi32>
    %21 = arith.select %19, %20, %17 : vector<1x256xi1>, vector<1x256xi32>
    %22 = tpu.iota {dimensions = array<i32: 0>} : vector<8x256xi32>
    %23 = vector.broadcast %21 : vector<1x256xi32> to vector<8x256xi32>
    %24 = arith.cmpi eq, %22, %23 : vector<8x256xi32>
    %25 = arith.extui %24 : vector<8x256xi1> to vector<8x256xi32>
    %26 = arith.sitofp %25 : vector<8x256xi32> to vector<8x256xf32>
    %27 = vector.broadcast %15 : vector<1x256xi32> to vector<8x256xi32>
    %28 = arith.cmpi eq, %22, %27 : vector<8x256xi32>
    %29 = arith.extui %28 : vector<8x256xi1> to vector<8x256xi32>
    %30 = arith.sitofp %29 : vector<8x256xi32> to vector<8x256xf32>
    %31 = vector.broadcast %0 : vector<8x1xf32> to vector<8x256xf32>
    %32 = arith.mulf %26, %31 : vector<8x256xf32>
    %cst_4 = arith.constant dense<0.000000e+00> : vector<256xf32>
    %33 = vector.multi_reduction <add>, %32, %cst_4 [0] : vector<8x256xf32> to vector<256xf32>
    %34 = vector.shape_cast %33 : vector<256xf32> to vector<1x256xf32>
    %35 = vector.broadcast %0 : vector<8x1xf32> to vector<8x256xf32>
    %36 = arith.mulf %30, %35 : vector<8x256xf32>
    %cst_5 = arith.constant dense<0.000000e+00> : vector<256xf32>
    %37 = vector.multi_reduction <add>, %36, %cst_5 [0] : vector<8x256xf32> to vector<256xf32>
    %38 = vector.shape_cast %37 : vector<256xf32> to vector<1x256xf32>
    %39 = arith.subf %38, %34 : vector<1x256xf32>
    %40 = tpu.reciprocal %39 {approx = true} : vector<1x256xf32> -> vector<1x256xf32>
    %41 = arith.mulf %39, %40 : vector<1x256xf32>
    %cst_6 = arith.constant 2.000000e+00 : f32
    %42 = vector.broadcast %cst_6 : f32 to vector<1x256xf32>
    %43 = arith.subf %42, %41 : vector<1x256xf32>
    %44 = arith.mulf %40, %43 : vector<1x256xf32>
    %45 = arith.subf %7, %34 : vector<1x256xf32>
    %46 = arith.mulf %45, %44 : vector<1x256xf32>
    %cst_7 = arith.constant 1.000000e+00 : f32
    %47 = vector.broadcast %cst_7 : f32 to vector<1x256xf32>
    %48 = arith.subf %47, %46 : vector<1x256xf32>
    %49 = vector.broadcast %48 : vector<1x256xf32> to vector<8x256xf32>
    %50 = arith.mulf %26, %49 : vector<8x256xf32>
    %51 = vector.broadcast %46 : vector<1x256xf32> to vector<8x256xf32>
    %52 = arith.mulf %30, %51 : vector<8x256xf32>
    %53 = arith.addf %50, %52 : vector<8x256xf32>
    %c0_8 = arith.constant 0 : index
    %c0_9 = arith.constant 0 : index
    %54 = vector.load %arg3[%c0_8, %c0_9] : memref<8x32xf32, #tpu.memory_space<vmem>>, vector<8x32xf32>
    %cst_10 = arith.constant dense<0.000000e+00> : vector<256x32xf32>
    %55 = tpu.matmul %53, %54, %cst_10 {dimension_numbers = #tpu.dot_dimension_numbers<[0], [0], [1], [1], [0, 1, 1, 1], [], []>} : vector<8x256xf32>, vector<8x32xf32>, vector<256x32xf32> -> vector<256x32xf32>
    %c0_11 = arith.constant 0 : index
    %c0_12 = arith.constant 0 : index
    %56 = vector.load %arg5[%c0_11, %c0_12] : memref<256x32xf32, #tpu.memory_space<vmem>>, vector<256x32xf32>
    tpu.vector_store %arg5[%c0_11, %c0_12], %55 {strides = array<i32>} : memref<256x32xf32, #tpu.memory_space<vmem>>, vector<256x32xf32>,
    return
  }
  func.func @transform_0(%arg0: i32, %arg1: i32) -> (i32, i32) {
    %c0_i32 = arith.constant 0 : i32
    %c0_i32_0 = arith.constant 0 : i32
    %c0_i32_1 = arith.constant 0 : i32
    return %c0_i32, %c0_i32_0 : i32, i32
  }
  func.func @transform_1(%arg0: i32, %arg1: i32) -> (i32, i32) {
    %c0_i32 = arith.constant 0 : i32
    %c0_i32_0 = arith.constant 0 : i32
    return %c0_i32, %arg1 : i32, i32
  }
  func.func @transform_2(%arg0: i32, %arg1: i32) -> (i32, i32) {
    %c0_i32 = arith.constant 0 : i32
    %c0_i32_0 = arith.constant 0 : i32
    return %c0_i32, %arg0 : i32, i32
  }
  func.func @transform_3(%arg0: i32, %arg1: i32) -> (i32, i32) {
    %c0_i32 = arith.constant 0 : i32
    return %arg0, %arg1 : i32, i32
  }
}

module attributes {stable_mosaic.version = 11 : i64} {
  func.func @_interp_kernel(%arg0: i32, %arg1: i32, %arg2: memref<8x1xf32, #tpu.memory_space<vmem>>, %arg3: memref<8x32xf32, #tpu.memory_space<vmem>>, %arg4: memref<1x256xf32, #tpu.memory_space<vmem>>, %arg5: memref<256x32xf32, #tpu.memory_space<vmem>>) attributes {dimension_semantics = [#tpu.dimension_semantics<parallel>, #tpu.dimension_semantics<parallel>], iteration_bounds = array<i64: 2, 1>, scalar_prefetch = 0 : i64, scratch_operands = 0 : i64, tpu.core_type = #tpu.core_type<tc>, window_params = [{pipeline_mode = #tpu.pipeline_mode<synchronous>, transform_indices = @transform_0, window_bounds = array<i64: 8, 1>}, {transform_indices = @transform_1, window_bounds = array<i64: 8, 32>}, {transform_indices = @transform_2, window_bounds = array<i64: 1, 256>}, {transform_indices = @transform_3, window_bounds = array<i64: 256, 32>}]} {
    %c0 = arith.constant 0 : index
    %c0_0 = arith.constant 0 : index
    %0 = vector.load %arg2[%c0, %c0_0] : memref<8x1xf32, #tpu.memory_space<vmem>>, vector<8x1xf32>
    %c0_1 = arith.constant 0 : index
    %c0_2 = arith.constant 0 : index
    %1 = vector.load %arg4[%c0_1, %c0_2] : memref<1x256xf32, #tpu.memory_space<vmem>>, vector<1x256xf32>
    %2 = vector.extract_strided_slice %0 {offsets = [0, 0], sizes = [1, 1], strides = [1, 1]} : vector<8x1xf32> to vector<1x1xf32>
    %3 = vector.extract_strided_slice %0 {offsets = [7, 0], sizes = [1, 1], strides = [1, 1]} : vector<8x1xf32> to vector<1x1xf32>
    %4 = vector.broadcast %2 : vector<1x1xf32> to vector<1x256xf32>
    %5 = arith.maximumf %1, %4 : vector<1x256xf32>
    %6 = vector.broadcast %3 : vector<1x1xf32> to vector<1x256xf32>
    %7 = arith.minimumf %5, %6 : vector<1x256xf32>
    %8 = vector.broadcast %0 : vector<8x1xf32> to vector<8x256xf32>
    %9 = vector.broadcast %7 : vector<1x256xf32> to vector<8x256xf32>
    %10 = arith.cmpf olt, %8, %9 : vector<8x256xf32>
    %11 = arith.extui %10 : vector<8x256xi1> to vector<8x256xi32>
    %12 = arith.sitofp %11 : vector<8x256xi32> to vector<8x256xf32>
    %cst = arith.constant dense<0.000000e+00> : vector<256xf32>
    %13 = vector.multi_reduction <add>, %12, %cst [0] : vector<8x256xf32> to vector<256xf32>
    %14 = vector.shape_cast %13 : vector<256xf32> to vector<1x256xf32>
    %15 = arith.fptosi %14 : vector<1x256xf32> to vector<1x256xi32>
    %c1_i32 = arith.constant 1 : i32
    %16 = vector.broadcast %c1_i32 : i32 to vector<1x256xi32>
    %17 = arith.subi %15, %16 : vector<1x256xi32>
    %c0_i32 = arith.constant 0 : i32
    %18 = vector.broadcast %c0_i32 : i32 to vector<1x256xi32>
    %19 = arith.cmpi slt, %17, %18 : vector<1x256xi32>
    %c1_i32_3 = arith.constant 1 : i32
    %20 = vector.broadcast %c1_i32_3 : i32 to vector<1x256xi32>
    %21 = arith.select %19, %20, %17 : vector<1x256xi1>, vector<1x256xi32>
    %22 = tpu.iota {dimensions = array<i32: 0>} : vector<8x256xi32>
    %23 = vector.broadcast %21 : vector<1x256xi32> to vector<8x256xi32>
    %24 = arith.cmpi eq, %22, %23 : vector<8x256xi32>
    %25 = arith.extui %24 : vector<8x256xi1> to vector<8x256xi32>
    %26 = arith.sitofp %25 : vector<8x256xi32> to vector<8x256xf32>
    %27 = vector.broadcast %15 : vector<1x256xi32> to vector<8x256xi32>
    %28 = arith.cmpi eq, %22, %27 : vector<8x256xi32>
    %29 = arith.extui %28 : vector<8x256xi1> to vector<8x256xi32>
    %30 = arith.sitofp %29 : vector<8x256xi32> to vector<8x256xf32>
    %31 = vector.broadcast %0 : vector<8x1xf32> to vector<8x256xf32>
    %32 = arith.mulf %26, %31 : vector<8x256xf32>
    %cst_4 = arith.constant dense<0.000000e+00> : vector<256xf32>
    %33 = vector.multi_reduction <add>, %32, %cst_4 [0] : vector<8x256xf32> to vector<256xf32>
    %34 = vector.shape_cast %33 : vector<256xf32> to vector<1x256xf32>
    %35 = vector.broadcast %0 : vector<8x1xf32> to vector<8x256xf32>
    %36 = arith.mulf %30, %35 : vector<8x256xf32>
    %cst_5 = arith.constant dense<0.000000e+00> : vector<256xf32>
    %37 = vector.multi_reduction <add>, %36, %cst_5 [0] : vector<8x256xf32> to vector<256xf32>
    %38 = vector.shape_cast %37 : vector<256xf32> to vector<1x256xf32>
    %39 = arith.subf %38, %34 : vector<1x256xf32>
    %40 = tpu.reciprocal %39 {approx = true} : vector<1x256xf32> -> vector<1x256xf32>
    %41 = arith.mulf %39, %40 : vector<1x256xf32>
    %cst_6 = arith.constant 2.000000e+00 : f32
    %42 = vector.broadcast %cst_6 : f32 to vector<1x256xf32>
    %43 = arith.subf %42, %41 : vector<1x256xf32>
    %44 = arith.mulf %40, %43 : vector<1x256xf32>
    %45 = arith.subf %7, %34 : vector<1x256xf32>
    %46 = arith.mulf %45, %44 : vector<1x256xf32>
    %cst_7 = arith.constant 1.000000e+00 : f32
    %47 = vector.broadcast %cst_7 : f32 to vector<1x256xf32>
    %48 = arith.subf %47, %46 : vector<1x256xf32>
    %49 = vector.broadcast %48 : vector<1x256xf32> to vector<8x256xf32>
    %50 = arith.mulf %26, %49 : vector<8x256xf32>
    %51 = vector.broadcast %46 : vector<1x256xf32> to vector<8x256xf32>
    %52 = arith.mulf %30, %51 : vector<8x256xf32>
    %53 = arith.addf %50, %52 : vector<8x256xf32>
    %c0_8 = arith.constant 0 : index
    %c0_9 = arith.constant 0 : index
    %54 = vector.load %arg3[%c0_8, %c0_9] : memref<8x32xf32, #tpu.memory_space<vmem>>, vector<8x32xf32>
    %cst_10 = arith.constant dense<0.000000e+00> : vector<256x32xf32>
    %55 = tpu.matmul %53, %54, %cst_10 {dimension_numbers = #tpu.dot_dimension_numbers<[0], [0], [1], [1], [0, 1, 1, 1], [], []>} : vector<8x256xf32>, vector<8x32xf32>, vector<256x32xf32> -> vector<256x32xf32>
    %c0_11 = arith.constant 0 : index
    %c0_12 = arith.constant 0 : index
    %56 = vector.load %arg5[%c0_11, %c0_12] : memref<256x32xf32, #tpu.memory_space<vmem>>, vector<256x32xf32>
    tpu.vector_store %arg5[%c0_11, %c0_12], %55 {strides = array<i32>} : memref<256x32xf32, #tpu.memory_space<vmem>>, vector<256x32xf32>,
    return
  }
  func.func @transform_0(%arg0: i32, %arg1: i32) -> (i32, i32) {
    %c0_i32 = arith.constant 0 : i32
    %c0_i32_0 = arith.constant 0 : i32
    %c0_i32_1 = arith.constant 0 : i32
    return %c0_i32, %c0_i32_0 : i32, i32
  }
  func.func @transform_1(%arg0: i32, %arg1: i32) -> (i32, i32) {
    %c0_i32 = arith.constant 0 : i32
    %c0_i32_0 = arith.constant 0 : i32
    return %c0_i32, %arg1 : i32, i32
  }
  func.func @transform_2(%arg0: i32, %arg1: i32) -> (i32, i32) {
    %c0_i32 = arith.constant 0 : i32
    %c0_i32_0 = arith.constant 0 : i32
    return %c0_i32, %arg0 : i32, i32
  }
  func.func @transform_3(%arg0: i32, %arg1: i32) -> (i32, i32) {
    %c0_i32 = arith.constant 0 : i32
    return %arg0, %arg1 : i32, i32
  }
}

</mosaic_0001>

<bundles_post_ra>
// kernel: tpu_custom_call.1
= control target key start
LH: loop header
LB: loop body
LE: loop exit
PB: predicated region body
PF: predicated region fallthrough
CT: control target
= control target key end

     0   :  { %s1109_s12 = smov 0   ;;  %s1111_s13 = smov 0   ;;  %s1284_s0 = inlined_call_operand.vmem [shape: f32[8,1], index: 0, kind: input, shape index: {}]   ;;  %s1285_s1 = inlined_call_operand.vmem [shape: f32[8,32], index: 1, kind: input, shape index: {}]   ;;  %s1286_s2 = inlined_call_operand.vmem [shape: f32[1,512], index: 2, kind: input, shape index: {}]   ;;  %s1287_s3 = inlined_call_operand.vmem [shape: f32[512,32], index: 3, kind: output, shape index: {}]  }
   0x1   :  { %s1113_s14 = smov 0  }
   0x2 LB: > { %s25_s15 = sadd.s32 1, %s1080_s13  ;;  %p895_p0 = scmp.ge.s32.totalorder %s1084_s14, 1  ;;  %s1084_s14 = sphi %s1113_s14, %s13_s14   ;;  %s1080_s13 = sphi %s1111_s13, %s1289_s13   ;;  %s1076_s12 = sphi %s1109_s12, %s1288_s12  }
   0x3   : > { %p27_p1 = scmp.ge.s32.totalorder %s25_s15, 2  ;;  %p160_p2 = scmp.lt.s32.totalorder %s1084_s14, 3 }
   0x5   : > { %s1291_s15 = smov (%p27_p1, %s25_s15), 0  ;;  %p161_p3 = pnand %p895_p0, %p160_p2 }
   0x6   : > { %v208_v0 = vld [vmem:[%s1284_s0] sm:$0xff] (!%p161_p3)  ;;  %v1086_v1 = vmov (!%p161_p3), 0   ;;  %s896_s18 = sshll.u32 (!%p161_p3), %s1076_s12, 1  ;;  %v214_v2 = vlaneseq (!%p161_p3)  ;;  %v1087_v15 = vmov (!%p161_p3), 0.0   ;;  %vm448_vm8 = vcmask (!%p161_p3), 64512   ;;  %s897_s24 = sshll.u32 (!%p161_p3), %s1076_s12, 5 }
   0x7   : > { %164 = sbr.rel (%p161_p3) target bundleno = 621 (0x26d), region = 32  ;;  %1057 = vset.pattern.permute.xlu0 (!%p161_p3), %v1086_v1  ;;  %p195_p4 = scmp.lt.s32.totalorder (!%p161_p3), %s896_s18, 3  ;;  %vm770_vm9 = vcmask (!%p161_p3), 261120  }
   0x8   : > { %212 = vperm.xlu0 (!%p161_p3), %1057, %v208_v0   ;;  %v1133_v3 = vshrl.u32 (!%p161_p3), %v214_v2, 7  ;;  %p200_p5 = scmp.lt.s32.totalorder (!%p161_p3), %s897_s24, 63 }
   0xa   : > { %v1139_v4 = vsub.s32 (!%p161_p3), 0, %v1133_v3  ;;  %v222_v5 = vsub.s32 (!%p161_p3), 7, %v1133_v3  ;;  %v1144_v11 = vsub.s32 (!%p161_p3), 1, %v1133_v3 }
   0xe   : > { %s1293_s18 = smov (!%p195_p4, %s896_s18), 3  ;;  %s1295_s24 = smov (!%p200_p5, %s897_s24), 63 }
   0xf   : > { %s197_s21 = scalar_lea.vmem %s1286_s2, %s1293_s18  ;;  %s898_s25 = sshll.u32 %s1295_s24, 3 }
  0x10   : > { %v209_v7 = vld [vmem:[%s197_s21] sm:$0x3]  ;;  %s1209_s28 = scalar_lea.vmem %s1287_s3, %s898_s25 }
  0x87   : > { %v213_v6 = vpop.permute.xlu0 %212 }
  0x88   : > { %v217_v8 = vrot.slane %v213_v6, %v1139_v4  ;;  %v223_v10 = vrot.slane %v213_v6, %v222_v5 }
  0x8a   : > { %v219_v9 = vmax.f32 %v209_v7, %v217_v8 }
  0x8c   : > { %v1146_v12 = vmin.f32 %v219_v9, %v223_v10  ;;  %v1088_v10 = vmov 1966171168  }
  0x8e   : > { %v231_v13 = vrot.slane %v1146_v12, %v1139_v4  ;;  %v235_v14 = vrot.slane %v1146_v12, %v1144_v11 }
  0x90   : > { %vm238_vm0 = vcmp.lt.f32.partialorder %v213_v6, %v231_v13  ;;  %vm239_vm1 = vcmp.lt.f32.partialorder %v213_v6, %v235_v14  ;;  %v320_v13 = vunpack.c.l.s4 %v1088_v10 }
  0x91   : > { %v899_v16 = vsel %vm238_vm0, 1.0, %v1087_v15  ;;  %v900_v17 = vsel %vm239_vm1, 1.0, %v1087_v15 }
  0x92   : > { %v244_v18 = vrot.slane %v899_v16, 4  ;;  %v250_v19 = vrot.slane %v900_v17, 4  ;;  %v321_v14 = vunpack.c.0.s8 %v320_v13 }
  0x94   : > { %v245_v20 = vadd.f32 %v899_v16, %v244_v18  ;;  %v251_v21 = vadd.f32 %v900_v17, %v250_v19  ;;  %v324_v17 = vsub.s32 %v321_v14, %v1133_v3 }
  0x96   : > { %v246_v22 = vrot.slane %v245_v20, 2  ;;  %v252_v23 = vrot.slane %v251_v21, 2 }
  0x98   : > { %v247_v24 = vadd.f32 %v246_v22, %v245_v20  ;;  %v253_v25 = vadd.f32 %v252_v23, %v251_v21 }
  0x9a   : > { %v248_v26 = vrot.slane %v247_v24, 1  ;;  %v254_v27 = vrot.slane %v253_v25, 1 }
  0x9c   : > { %v249_v28 = vadd.f32 %v248_v26, %v247_v24  ;;  %v255_v29 = vadd.f32 %v254_v27, %v253_v25 }
  0x9e   : > { %v1026_v30 = vtrunc.f32 %v249_v28  ;;  %v1028_v31 = vtrunc.f32 %v255_v29 }
  0xa0   : > { %v1027_v32 = vcvt.f32.s32 %v1026_v30  ;;  %v1029_v33 = vcvt.f32.s32 %v1028_v31 }
  0xa2   : > { %v901_v34 = vadd.s32 4294967295, %v1027_v32  ;;  %v902_v35 = vadd.s32 4294967295, %v1029_v33  ;;  %vm272_vm2 = vcmp.eq.s32.totalorder %v1133_v3, %v1027_v32  ;;  %vm273_vm3 = vcmp.eq.s32.totalorder %v1133_v3, %v1029_v33 }
  0xa3   : > { %v1154_v36 = vsel %vm272_vm2, 1.0, %v1087_v15  ;;  %v1156_v37 = vsel %vm273_vm3, 1.0, %v1087_v15 }
  0xa4   : > { %vm260_vm4 = vcmp.lt.s32.totalorder %v901_v34, 0  ;;  %vm261_vm5 = vcmp.lt.s32.totalorder %v902_v35, 0  ;;  %v292_v38 = vmul.f32 %v1154_v36, %v213_v6  ;;  %v293_v39 = vmul.f32 %v1156_v37, %v213_v6 }
  0xa5   : > { %v262_v40 = vsel %vm260_vm4, 1, %v901_v34  ;;  %v263_v41 = vsel %vm261_vm5, 1, %v902_v35 }
  0xa6   : > { %vm266_vm6 = vcmp.eq.s32.totalorder %v1133_v3, %v262_v40  ;;  %vm267_vm7 = vcmp.eq.s32.totalorder %v1133_v3, %v263_v41  ;;  %v294_v42 = vrot.slane %v292_v38, 4  ;;  %v300_v43 = vrot.slane %v293_v39, 4 }
  0xa7   : > { %v903_v44 = vsel %vm266_vm6, 1.0, %v1087_v15  ;;  %v904_v45 = vsel %vm267_vm7, 1.0, %v1087_v15 }
  0xa8   : > { %v278_v46 = vmul.f32 %v903_v44, %v213_v6  ;;  %v279_v47 = vmul.f32 %v904_v45, %v213_v6  ;;  %v295_v48 = vadd.f32 %v294_v42, %v292_v38  ;;  %v301_v49 = vadd.f32 %v300_v43, %v293_v39 }
  0xaa   : > { %v280_v50 = vrot.slane %v278_v46, 4  ;;  %v286_v51 = vrot.slane %v279_v47, 4  ;;  %v296_v52 = vrot.slane %v295_v48, 2  ;;  %v302_v53 = vrot.slane %v301_v49, 2 }
  0xac   : > { %v281_v54 = vadd.f32 %v280_v50, %v278_v46  ;;  %v287_v55 = vadd.f32 %v286_v51, %v279_v47  ;;  %v297_v56 = vadd.f32 %v296_v52, %v295_v48  ;;  %v303_v57 = vadd.f32 %v302_v53, %v301_v49 }
  0xae   : > { %v282_v58 = vrot.slane %v281_v54, 2  ;;  %v288_v59 = vrot.slane %v287_v55, 2  ;;  %v298_v62 = vrot.slane %v297_v56, 1  ;;  %v304_v63 = vrot.slane %v303_v57, 1 }
  0xb0   : > { %v283_v60 = vadd.f32 %v282_v58, %v281_v54  ;;  %v289_v61 = vadd.f32 %v288_v59, %v287_v55  ;;  %v299_v6 = vadd.f32 %v298_v62, %v297_v56  ;;  %v305_v7 = vadd.f32 %v304_v63, %v303_v57 }
  0xb2   : > { %v284_v0 = vrot.slane %v283_v60, 1  ;;  %v290_v1 = vrot.slane %v289_v61, 1 }
  0xb4   : > { %v285_v2 = vadd.f32 %v284_v0, %v283_v60  ;;  %v291_v5 = vadd.f32 %v290_v1, %v289_v61 }
  0xb6   : > { %v306_v8 = vsub.f32 %v299_v6, %v285_v2  ;;  %v307_v9 = vsub.f32 %v305_v7, %v291_v5  ;;  %v318_v16 = vcombine.low %v285_v2, %v291_v5 }
  0xb8   : > { %1058 = vrcp.f32 %v306_v8  ;;  %v325_v23 = vrot.slane %v318_v16, %v324_v17 }
  0xb9   : > { %1060 = vrcp.f32 %v307_v9 }
  0xba   : > { %v332_v26 = vrot.slane %v325_v23, %v324_v17 }
  0xbc   : > { %v334_v29 = vsub.f32 %v1146_v12, %v332_v26  ;;  %v383_v12 = vld [vmem:[%s1285_s1] sm:$0xff] }
  0xbd   : > { %974 = vmatprep.subr.mxu0 %v383_v12  ;;  %1024 = vmatprep.subr.mxu1 %v383_v12 }
  0xbe   : > { %975 = vmatpush3.msra.mxu0 %v383_v12  ;;  %1025 = vmatpush3.msra.mxu1 %v383_v12 }
  0xc2   : > { %v1059_v15 = vpop.eup %1058 }
  0xc3   : > { %v1061_v18 = vpop.eup %1060  ;;  %v310_v19 = vmul.f32 %v1059_v15, %v306_v8 }
  0xc4   : > { %v311_v20 = vmul.f32 %v1061_v18, %v307_v9 }
  0xc5   : > { %v312_v21 = vsub.f32 2.0, %v310_v19 }
  0xc6   : > { %v313_v22 = vsub.f32 2.0, %v311_v20 }
  0xc7   : > { %v314_v24 = vmul.f32 %v1059_v15, %v312_v21 }
  0xc8   : > { %v315_v25 = vmul.f32 %v1061_v18, %v313_v22 }
  0xca   : > { %v337_v27 = vcombine.low %v314_v24, %v315_v25 }
  0xcc   : > { %v344_v28 = vrot.slane %v337_v27, %v324_v17 }
  0xce   : > { %v351_v30 = vrot.slane %v344_v28, %v324_v17 }
  0xd0   : > { %v353_v31 = vmul.f32 %v351_v30, %v334_v29 }
  0xd2   : > { %v354_v32 = vsub.f32 1.0, %v353_v31  ;;  %v376_v33 = vrot.slane %v353_v31, %v1144_v11  ;;  %v372_v3 = vrot.slane %v353_v31, %v1139_v4 }
  0xd4   : > { %v363_v34 = vrot.slane %v354_v32, %v1144_v11  ;;  %v359_v35 = vrot.slane %v354_v32, %v1139_v4  ;;  %v380_v39 = vmul.f32 %v1156_v37, %v376_v33  ;;  %v379_v41 = vmul.f32 %v1154_v36, %v372_v3 }
  0xd6   : > { %v367_v38 = vmul.f32 %v904_v45, %v363_v34  ;;  %v366_v40 = vmul.f32 %v903_v44, %v359_v35 }
  0xd8   : > { %v382_v42 = vadd.f32 %v380_v39, %v367_v38  ;;  %v381_v43 = vadd.f32 %v379_v41, %v366_v40 }
  0xda   : > { %416 = vxpose.xlu1.b32.start.end [1/1] (short) %v382_v42, 128  ;;  %384 = vxpose.xlu0.b32.start.end [1/1] (short) %v381_v43, 128 }
 0x15a   : > { %v432_v4 = vpop.trf.xlu1  ;;  %v400_v11 = vpop.trf.xlu0 }
 0x15b   : > { %976 = vmatprep.mubr.msk.f32.mxu0 %vm448_vm8, %v400_v11  ;;  %1000 = vmatprep.mubr.msk.f32.mxu1 %vm448_vm8, %v432_v4 }
 0x15e   : > { %v433_v36 = vpop.trf.xlu1  ;;  %v401_v37 = vpop.trf.xlu0 }
 0x15f   : > { %977 = vmatmul.mubr.msk.f32.vlgmr.msra.gmra.mrb[0].mxu0 %vm448_vm8, %v401_v37  ;;  %1001 = vmatmul.mubr.msk.f32.vlgmr.msra.gmra.mrb[0].mxu1 %vm448_vm8, %v433_v36 }
 0x162   : > { %v434_v44 = vpop.trf.xlu1  ;;  %v402_v45 = vpop.trf.xlu0 }
 0x163   : > { %979 = vmatprep.mubr.msk.f32.mxu0 %vm448_vm8, %v402_v45  ;;  %1003 = vmatprep.mubr.msk.f32.mxu1 %vm448_vm8, %v434_v44 }
 0x166   : > { %v435_v46 = vpop.trf.xlu1  ;;  %v403_v47 = vpop.trf.xlu0 }
 0x167   : > { %980 = vmatmul.mubr.msk.f32.gmra.mrb[2].mxu0 %vm448_vm8, %v403_v47  ;;  %1004 = vmatmul.mubr.msk.f32.gmra.mrb[2].mxu1 %vm448_vm8, %v435_v46 }
 0x16a   : > { %v436_v48 = vpop.trf.xlu1  ;;  %v404_v49 = vpop.trf.xlu0 }
 0x16b   : > { %982 = vmatprep.mubr.msk.f32.mxu0 %vm448_vm8, %v404_v49  ;;  %1006 = vmatprep.mubr.msk.f32.mxu1 %vm448_vm8, %v436_v48 }
 0x16e   : > { %v437_v50 = vpop.trf.xlu1  ;;  %v405_v51 = vpop.trf.xlu0 }
 0x16f   : > { %983 = vmatmul.mubr.msk.f32.gmra.mrb[4].mxu0 %vm448_vm8, %v405_v51  ;;  %1007 = vmatmul.mubr.msk.f32.gmra.mrb[4].mxu1 %vm448_vm8, %v437_v50 }
 0x172   : > { %v438_v52 = vpop.trf.xlu1  ;;  %v406_v53 = vpop.trf.xlu0 }
 0x173   : > { %985 = vmatprep.mubr.msk.f32.mxu0 %vm448_vm8, %v406_v53  ;;  %1009 = vmatprep.mubr.msk.f32.mxu1 %vm448_vm8, %v438_v52 }
 0x176   : > { %v439_v54 = vpop.trf.xlu1  ;;  %v407_v55 = vpop.trf.xlu0 }
 0x177   : > { %986 = vmatmul.mubr.msk.f32.gmra.mrb[6].mxu0 %vm448_vm8, %v407_v55  ;;  %1010 = vmatmul.mubr.msk.f32.gmra.mrb[6].mxu1 %vm448_vm8, %v439_v54 }
 0x17a   : > { %v440_v56 = vpop.trf.xlu1  ;;  %v408_v57 = vpop.trf.xlu0 }
 0x17b   : > { %988 = vmatprep.mubr.msk.f32.mxu0 %vm448_vm8, %v408_v57  ;;  %1012 = vmatprep.mubr.msk.f32.mxu1 %vm448_vm8, %v440_v56 }
 0x17e   : > { %v441_v58 = vpop.trf.xlu1  ;;  %v409_v59 = vpop.trf.xlu0 }
 0x17f   : > { %989 = vmatmul.mubr.msk.f32.gmra.mrb[8].mxu0 %vm448_vm8, %v409_v59  ;;  %1013 = vmatmul.mubr.msk.f32.gmra.mrb[8].mxu1 %vm448_vm8, %v441_v58 }
 0x182   : > { %v442_v60 = vpop.trf.xlu1  ;;  %v410_v61 = vpop.trf.xlu0 }
 0x183   : > { %991 = vmatprep.mubr.msk.f32.mxu0 %vm448_vm8, %v410_v61  ;;  %1015 = vmatprep.mubr.msk.f32.mxu1 %vm448_vm8, %v442_v60 }
 0x186   : > { %v443_v62 = vpop.trf.xlu1  ;;  %v411_v63 = vpop.trf.xlu0 }
 0x187   : > { %992 = vmatmul.mubr.msk.f32.gmra.mrb[10].mxu0 %vm448_vm8, %v411_v63  ;;  %1016 = vmatmul.mubr.msk.f32.gmra.mrb[10].mxu1 %vm448_vm8, %v443_v62 }
 0x18a   : > { %v444_v0 = vpop.trf.xlu1  ;;  %v412_v1 = vpop.trf.xlu0 }
 0x18b   : > { %994 = vmatprep.mubr.msk.f32.mxu0 %vm448_vm8, %v412_v1  ;;  %1018 = vmatprep.mubr.msk.f32.mxu1 %vm448_vm8, %v444_v0 }
 0x18e   : > { %v445_v2 = vpop.trf.xlu1  ;;  %v413_v5 = vpop.trf.xlu0 }
 0x18f   : > { %995 = vmatmul.mubr.msk.f32.gmra.mrb[12].mxu0 %vm448_vm8, %v413_v5  ;;  %1019 = vmatmul.mubr.msk.f32.gmra.mrb[12].mxu1 %vm448_vm8, %v445_v2 }
 0x192   : > { %v446_v6 = vpop.trf.xlu1  ;;  %v414_v7 = vpop.trf.xlu0 }
 0x193   : > { %997 = vmatprep.mubr.msk.f32.mxu0 %vm448_vm8, %v414_v7  ;;  %1021 = vmatprep.mubr.msk.f32.mxu1 %vm448_vm8, %v446_v6 }
 0x196   : > { %v447_v8 = vpop.trf.xlu1  ;;  %v415_v9 = vpop.trf.xlu0 }
 0x197   : > { %998 = vmatmul.mubr.msk.f32.gmra.mrb[14].mxu0 %vm448_vm8, %v415_v9  ;;  %1022 = vmatmul.mubr.msk.f32.gmra.mrb[14].mxu1 %vm448_vm8, %v447_v8 }
 0x232   : > { %v978_v10 = vpop.f32.mrb[0].mxu0  ;;  %v1002_v13 = vpop.f32.mrb[0].mxu1 }
 0x233   : > { %772 = vst.msk [vmem:[%s1209_s28 + $0x8] sm:$0xff] %vm770_vm9, %v978_v10  ;;  %788 = vst.msk [vmem:[%s1209_s28 + $0x88] sm:$0xff] %vm770_vm9, %v1002_v13  ;;  %v611_v14 = vpop.f32.mrb[1].mxu0  ;;  %v691_v15 = vpop.f32.mrb[1].mxu1 }
 0x234   : > { %771 = vst.msk [vmem:[%s1209_s28] sm:$0xff] %vm770_vm9, %v611_v14  ;;  %787 = vst.msk [vmem:[%s1209_s28 + $0x80] sm:$0xff] %vm770_vm9, %v691_v15 }
 0x23a   : > { %v981_v16 = vpop.f32.mrb[2].mxu0  ;;  %v1005_v17 = vpop.f32.mrb[2].mxu1 }
 0x23b   : > { %774 = vst.msk [vmem:[%s1209_s28 + $0x18] sm:$0xff] %vm770_vm9, %v981_v16  ;;  %790 = vst.msk [vmem:[%s1209_s28 + $0x98] sm:$0xff] %vm770_vm9, %v1005_v17  ;;  %v621_v18 = vpop.f32.mrb[3].mxu0  ;;  %v701_v19 = vpop.f32.mrb[3].mxu1 }
 0x23c   : > { %773 = vst.msk [vmem:[%s1209_s28 + $0x10] sm:$0xff] %vm770_vm9, %v621_v18  ;;  %789 = vst.msk [vmem:[%s1209_s28 + $0x90] sm:$0xff] %vm770_vm9, %v701_v19 }
 0x242   : > { %v984_v20 = vpop.f32.mrb[4].mxu0  ;;  %v1008_v21 = vpop.f32.mrb[4].mxu1 }
 0x243   : > { %776 = vst.msk [vmem:[%s1209_s28 + $0x28] sm:$0xff] %vm770_vm9, %v984_v20  ;;  %792 = vst.msk [vmem:[%s1209_s28 + $0xa8] sm:$0xff] %vm770_vm9, %v1008_v21  ;;  %v631_v22 = vpop.f32.mrb[5].mxu0  ;;  %v711_v23 = vpop.f32.mrb[5].mxu1 }
 0x244   : > { %775 = vst.msk [vmem:[%s1209_s28 + $0x20] sm:$0xff] %vm770_vm9, %v631_v22  ;;  %791 = vst.msk [vmem:[%s1209_s28 + $0xa0] sm:$0xff] %vm770_vm9, %v711_v23 }
 0x24a   : > { %v987_v24 = vpop.f32.mrb[6].mxu0  ;;  %v1011_v25 = vpop.f32.mrb[6].mxu1 }
 0x24b   : > { %778 = vst.msk [vmem:[%s1209_s28 + $0x38] sm:$0xff] %vm770_vm9, %v987_v24  ;;  %794 = vst.msk [vmem:[%s1209_s28 + $0xb8] sm:$0xff] %vm770_vm9, %v1011_v25  ;;  %v641_v26 = vpop.f32.mrb[7].mxu0  ;;  %v721_v27 = vpop.f32.mrb[7].mxu1 }
 0x24c   : > { %777 = vst.msk [vmem:[%s1209_s28 + $0x30] sm:$0xff] %vm770_vm9, %v641_v26  ;;  %793 = vst.msk [vmem:[%s1209_s28 + $0xb0] sm:$0xff] %vm770_vm9, %v721_v27 }
 0x252   : > { %v990_v28 = vpop.f32.mrb[8].mxu0  ;;  %v1014_v29 = vpop.f32.mrb[8].mxu1 }
 0x253   : > { %780 = vst.msk [vmem:[%s1209_s28 + $0x48] sm:$0xff] %vm770_vm9, %v990_v28  ;;  %796 = vst.msk [vmem:[%s1209_s28 + $0xc8] sm:$0xff] %vm770_vm9, %v1014_v29  ;;  %v651_v30 = vpop.f32.mrb[9].mxu0  ;;  %v731_v31 = vpop.f32.mrb[9].mxu1 }
 0x254   : > { %779 = vst.msk [vmem:[%s1209_s28 + $0x40] sm:$0xff] %vm770_vm9, %v651_v30  ;;  %795 = vst.msk [vmem:[%s1209_s28 + $0xc0] sm:$0xff] %vm770_vm9, %v731_v31 }
 0x25a   : > { %v993_v32 = vpop.f32.mrb[10].mxu0  ;;  %v1017_v33 = vpop.f32.mrb[10].mxu1 }
 0x25b   : > { %782 = vst.msk [vmem:[%s1209_s28 + $0x58] sm:$0xff] %vm770_vm9, %v993_v32  ;;  %798 = vst.msk [vmem:[%s1209_s28 + $0xd8] sm:$0xff] %vm770_vm9, %v1017_v33  ;;  %v661_v3 = vpop.f32.mrb[11].mxu0  ;;  %v741_v34 = vpop.f32.mrb[11].mxu1 }
 0x25c   : > { %781 = vst.msk [vmem:[%s1209_s28 + $0x50] sm:$0xff] %vm770_vm9, %v661_v3  ;;  %797 = vst.msk [vmem:[%s1209_s28 + $0xd0] sm:$0xff] %vm770_vm9, %v741_v34 }
 0x262   : > { %v996_v35 = vpop.f32.mrb[12].mxu0  ;;  %v1020_v38 = vpop.f32.mrb[12].mxu1 }
 0x263   : > { %784 = vst.msk [vmem:[%s1209_s28 + $0x68] sm:$0xff] %vm770_vm9, %v996_v35  ;;  %800 = vst.msk [vmem:[%s1209_s28 + $0xe8] sm:$0xff] %vm770_vm9, %v1020_v38  ;;  %v671_v39 = vpop.f32.mrb[13].mxu0  ;;  %v751_v40 = vpop.f32.mrb[13].mxu1 }
 0x264   : > { %783 = vst.msk [vmem:[%s1209_s28 + $0x60] sm:$0xff] %vm770_vm9, %v671_v39  ;;  %799 = vst.msk [vmem:[%s1209_s28 + $0xe0] sm:$0xff] %vm770_vm9, %v751_v40 }
 0x26a   : > { %v999_v41 = vpop.f32.mrb[14].mxu0  ;;  %v1023_v42 = vpop.f32.mrb[14].mxu1 }
 0x26b   : > { %786 = vst.msk [vmem:[%s1209_s28 + $0x78] sm:$0xff] %vm770_vm9, %v999_v41  ;;  %802 = vst.msk [vmem:[%s1209_s28 + $0xf8] sm:$0xff] %vm770_vm9, %v1023_v42  ;;  %v681_v43 = vpop.f32.mrb[15].mxu0  ;;  %v761_v12 = vpop.f32.mrb[15].mxu1 }
 0x26c   : > { %785 = vst.msk [vmem:[%s1209_s28 + $0x70] sm:$0xff] %vm770_vm9, %v681_v43  ;;  %801 = vst.msk [vmem:[%s1209_s28 + $0xf0] sm:$0xff] %vm770_vm9, %v761_v12 }
 0x26d PF: > { %s13_s14 = sadd.s32 1, %s1084_s14   ;;  %s1288_s12 = smov %s1080_s13 }
 0x26e   : > { %p10_p6 = scmp.ge.s32.totalorder %s13_s14, 4   ;;  %s1289_s13 = smov %s1291_s15 }
 0x270   :  { %12 = sbr.rel (!%p10_p6) target bundleno = 2 (0x2), region = 65 }

// kernel: tpu_custom_call.1
= control target key start
LH: loop header
LB: loop body
LE: loop exit
PB: predicated region body
PF: predicated region fallthrough
CT: control target
= control target key end

     0   :  { %s1109_s12 = smov 0   ;;  %s1111_s13 = smov 0   ;;  %s1284_s0 = inlined_call_operand.vmem [shape: f32[8,1], index: 0, kind: input, shape index: {}]   ;;  %s1285_s1 = inlined_call_operand.vmem [shape: f32[8,32], index: 1, kind: input, shape index: {}]   ;;  %s1286_s2 = inlined_call_operand.vmem [shape: f32[1,512], index: 2, kind: input, shape index: {}]   ;;  %s1287_s3 = inlined_call_operand.vmem [shape: f32[512,32], index: 3, kind: output, shape index: {}]  }
   0x1   :  { %s1113_s14 = smov 0  }
   0x2 LB: > { %s25_s15 = sadd.s32 1, %s1080_s13  ;;  %p895_p0 = scmp.ge.s32.totalorder %s1084_s14, 1  ;;  %s1084_s14 = sphi %s1113_s14, %s13_s14   ;;  %s1080_s13 = sphi %s1111_s13, %s1289_s13   ;;  %s1076_s12 = sphi %s1109_s12, %s1288_s12  }
   0x3   : > { %p27_p1 = scmp.ge.s32.totalorder %s25_s15, 2  ;;  %p160_p2 = scmp.lt.s32.totalorder %s1084_s14, 3 }
   0x5   : > { %s1291_s15 = smov (%p27_p1, %s25_s15), 0  ;;  %p161_p3 = pnand %p895_p0, %p160_p2 }
   0x6   : > { %v208_v0 = vld [vmem:[%s1284_s0] sm:$0xff] (!%p161_p3)  ;;  %v1086_v1 = vmov (!%p161_p3), 0   ;;  %s896_s18 = sshll.u32 (!%p161_p3), %s1076_s12, 1  ;;  %v214_v2 = vlaneseq (!%p161_p3)  ;;  %v1087_v15 = vmov (!%p161_p3), 0.0   ;;  %vm448_vm8 = vcmask (!%p161_p3), 64512   ;;  %s897_s24 = sshll.u32 (!%p161_p3), %s1076_s12, 5 }
   0x7   : > { %164 = sbr.rel (%p161_p3) target bundleno = 621 (0x26d), region = 32  ;;  %1057 = vset.pattern.permute.xlu0 (!%p161_p3), %v1086_v1  ;;  %p195_p4 = scmp.lt.s32.totalorder (!%p161_p3), %s896_s18, 3  ;;  %vm770_vm9 = vcmask (!%p161_p3), 261120  }
   0x8   : > { %212 = vperm.xlu0 (!%p161_p3), %1057, %v208_v0   ;;  %v1133_v3 = vshrl.u32 (!%p161_p3), %v214_v2, 7  ;;  %p200_p5 = scmp.lt.s32.totalorder (!%p161_p3), %s897_s24, 63 }
   0xa   : > { %v1139_v4 = vsub.s32 (!%p161_p3), 0, %v1133_v3  ;;  %v222_v5 = vsub.s32 (!%p161_p3), 7, %v1133_v3  ;;  %v1144_v11 = vsub.s32 (!%p161_p3), 1, %v1133_v3 }
   0xe   : > { %s1293_s18 = smov (!%p195_p4, %s896_s18), 3  ;;  %s1295_s24 = smov (!%p200_p5, %s897_s24), 63 }
   0xf   : > { %s197_s21 = scalar_lea.vmem %s1286_s2, %s1293_s18  ;;  %s898_s25 = sshll.u32 %s1295_s24, 3 }
  0x10   : > { %v209_v7 = vld [vmem:[%s197_s21] sm:$0x3]  ;;  %s1209_s28 = scalar_lea.vmem %s1287_s3, %s898_s25 }
  0x87   : > { %v213_v6 = vpop.permute.xlu0 %212 }
  0x88   : > { %v217_v8 = vrot.slane %v213_v6, %v1139_v4  ;;  %v223_v10 = vrot.slane %v213_v6, %v222_v5 }
  0x8a   : > { %v219_v9 = vmax.f32 %v209_v7, %v217_v8 }
  0x8c   : > { %v1146_v12 = vmin.f32 %v219_v9, %v223_v10  ;;  %v1088_v10 = vmov 1966171168  }
  0x8e   : > { %v231_v13 = vrot.slane %v1146_v12, %v1139_v4  ;;  %v235_v14 = vrot.slane %v1146_v12, %v1144_v11 }
  0x90   : > { %vm238_vm0 = vcmp.lt.f32.partialorder %v213_v6, %v231_v13  ;;  %vm239_vm1 = vcmp.lt.f32.partialorder %v213_v6, %v235_v14  ;;  %v320_v13 = vunpack.c.l.s4 %v1088_v10 }
  0x91   : > { %v899_v16 = vsel %vm238_vm0, 1.0, %v1087_v15  ;;  %v900_v17 = vsel %vm239_vm1, 1.0, %v1087_v15 }
  0x92   : > { %v244_v18 = vrot.slane %v899_v16, 4  ;;  %v250_v19 = vrot.slane %v900_v17, 4  ;;  %v321_v14 = vunpack.c.0.s8 %v320_v13 }
  0x94   : > { %v245_v20 = vadd.f32 %v899_v16, %v244_v18  ;;  %v251_v21 = vadd.f32 %v900_v17, %v250_v19  ;;  %v324_v17 = vsub.s32 %v321_v14, %v1133_v3 }
  0x96   : > { %v246_v22 = vrot.slane %v245_v20, 2  ;;  %v252_v23 = vrot.slane %v251_v21, 2 }
  0x98   : > { %v247_v24 = vadd.f32 %v246_v22, %v245_v20  ;;  %v253_v25 = vadd.f32 %v252_v23, %v251_v21 }
  0x9a   : > { %v248_v26 = vrot.slane %v247_v24, 1  ;;  %v254_v27 = vrot.slane %v253_v25, 1 }
  0x9c   : > { %v249_v28 = vadd.f32 %v248_v26, %v247_v24  ;;  %v255_v29 = vadd.f32 %v254_v27, %v253_v25 }
  0x9e   : > { %v1026_v30 = vtrunc.f32 %v249_v28  ;;  %v1028_v31 = vtrunc.f32 %v255_v29 }
  0xa0   : > { %v1027_v32 = vcvt.f32.s32 %v1026_v30  ;;  %v1029_v33 = vcvt.f32.s32 %v1028_v31 }
  0xa2   : > { %v901_v34 = vadd.s32 4294967295, %v1027_v32  ;;  %v902_v35 = vadd.s32 4294967295, %v1029_v33  ;;  %vm272_vm2 = vcmp.eq.s32.totalorder %v1133_v3, %v1027_v32  ;;  %vm273_vm3 = vcmp.eq.s32.totalorder %v1133_v3, %v1029_v33 }
  0xa3   : > { %v1154_v36 = vsel %vm272_vm2, 1.0, %v1087_v15  ;;  %v1156_v37 = vsel %vm273_vm3, 1.0, %v1087_v15 }
  0xa4   : > { %vm260_vm4 = vcmp.lt.s32.totalorder %v901_v34, 0  ;;  %vm261_vm5 = vcmp.lt.s32.totalorder %v902_v35, 0  ;;  %v292_v38 = vmul.f32 %v1154_v36, %v213_v6  ;;  %v293_v39 = vmul.f32 %v1156_v37, %v213_v6 }
  0xa5   : > { %v262_v40 = vsel %vm260_vm4, 1, %v901_v34  ;;  %v263_v41 = vsel %vm261_vm5, 1, %v902_v35 }
  0xa6   : > { %vm266_vm6 = vcmp.eq.s32.totalorder %v1133_v3, %v262_v40  ;;  %vm267_vm7 = vcmp.eq.s32.totalorder %v1133_v3, %v263_v41  ;;  %v294_v42 = vrot.slane %v292_v38, 4  ;;  %v300_v43 = vrot.slane %v293_v39, 4 }
  0xa7   : > { %v903_v44 = vsel %vm266_vm6, 1.0, %v1087_v15  ;;  %v904_v45 = vsel %vm267_vm7, 1.0, %v1087_v15 }
  0xa8   : > { %v278_v46 = vmul.f32 %v903_v44, %v213_v6  ;;  %v279_v47 = vmul.f32 %v904_v45, %v213_v6  ;;  %v295_v48 = vadd.f32 %v294_v42, %v292_v38  ;;  %v301_v49 = vadd.f32 %v300_v43, %v293_v39 }
  0xaa   : > { %v280_v50 = vrot.slane %v278_v46, 4  ;;  %v286_v51 = vrot.slane %v279_v47, 4  ;;  %v296_v52 = vrot.slane %v295_v48, 2  ;;  %v302_v53 = vrot.slane %v301_v49, 2 }
  0xac   : > { %v281_v54 = vadd.f32 %v280_v50, %v278_v46  ;;  %v287_v55 = vadd.f32 %v286_v51, %v279_v47  ;;  %v297_v56 = vadd.f32 %v296_v52, %v295_v48  ;;  %v303_v57 = vadd.f32 %v302_v53, %v301_v49 }
  0xae   : > { %v282_v58 = vrot.slane %v281_v54, 2  ;;  %v288_v59 = vrot.slane %v287_v55, 2  ;;  %v298_v62 = vrot.slane %v297_v56, 1  ;;  %v304_v63 = vrot.slane %v303_v57, 1 }
  0xb0   : > { %v283_v60 = vadd.f32 %v282_v58, %v281_v54  ;;  %v289_v61 = vadd.f32 %v288_v59, %v287_v55  ;;  %v299_v6 = vadd.f32 %v298_v62, %v297_v56  ;;  %v305_v7 = vadd.f32 %v304_v63, %v303_v57 }
  0xb2   : > { %v284_v0 = vrot.slane %v283_v60, 1  ;;  %v290_v1 = vrot.slane %v289_v61, 1 }
  0xb4   : > { %v285_v2 = vadd.f32 %v284_v0, %v283_v60  ;;  %v291_v5 = vadd.f32 %v290_v1, %v289_v61 }
  0xb6   : > { %v306_v8 = vsub.f32 %v299_v6, %v285_v2  ;;  %v307_v9 = vsub.f32 %v305_v7, %v291_v5  ;;  %v318_v16 = vcombine.low %v285_v2, %v291_v5 }
  0xb8   : > { %1058 = vrcp.f32 %v306_v8  ;;  %v325_v23 = vrot.slane %v318_v16, %v324_v17 }
  0xb9   : > { %1060 = vrcp.f32 %v307_v9 }
  0xba   : > { %v332_v26 = vrot.slane %v325_v23, %v324_v17 }
  0xbc   : > { %v334_v29 = vsub.f32 %v1146_v12, %v332_v26  ;;  %v383_v12 = vld [vmem:[%s1285_s1] sm:$0xff] }
  0xbd   : > { %974 = vmatprep.subr.mxu0 %v383_v12  ;;  %1024 = vmatprep.subr.mxu1 %v383_v12 }
  0xbe   : > { %975 = vmatpush3.msra.mxu0 %v383_v12  ;;  %1025 = vmatpush3.msra.mxu1 %v383_v12 }
  0xc2   : > { %v1059_v15 = vpop.eup %1058 }
  0xc3   : > { %v1061_v18 = vpop.eup %1060  ;;  %v310_v19 = vmul.f32 %v1059_v15, %v306_v8 }
  0xc4   : > { %v311_v20 = vmul.f32 %v1061_v18, %v307_v9 }
  0xc5   : > { %v312_v21 = vsub.f32 2.0, %v310_v19 }
  0xc6   : > { %v313_v22 = vsub.f32 2.0, %v311_v20 }
  0xc7   : > { %v314_v24 = vmul.f32 %v1059_v15, %v312_v21 }
  0xc8   : > { %v315_v25 = vmul.f32 %v1061_v18, %v313_v22 }
  0xca   : > { %v337_v27 = vcombine.low %v314_v24, %v315_v25 }
  0xcc   : > { %v344_v28 = vrot.slane %v337_v27, %v324_v17 }
  0xce   : > { %v351_v30 = vrot.slane %v344_v28, %v324_v17 }
  0xd0   : > { %v353_v31 = vmul.f32 %v351_v30, %v334_v29 }
  0xd2   : > { %v354_v32 = vsub.f32 1.0, %v353_v31  ;;  %v376_v33 = vrot.slane %v353_v31, %v1144_v11  ;;  %v372_v3 = vrot.slane %v353_v31, %v1139_v4 }
  0xd4   : > { %v363_v34 = vrot.slane %v354_v32, %v1144_v11  ;;  %v359_v35 = vrot.slane %v354_v32, %v1139_v4  ;;  %v380_v39 = vmul.f32 %v1156_v37, %v376_v33  ;;  %v379_v41 = vmul.f32 %v1154_v36, %v372_v3 }
  0xd6   : > { %v367_v38 = vmul.f32 %v904_v45, %v363_v34  ;;  %v366_v40 = vmul.f32 %v903_v44, %v359_v35 }
  0xd8   : > { %v382_v42 = vadd.f32 %v380_v39, %v367_v38  ;;  %v381_v43 = vadd.f32 %v379_v41, %v366_v40 }
  0xda   : > { %416 = vxpose.xlu1.b32.start.end [1/1] (short) %v382_v42, 128  ;;  %384 = vxpose.xlu0.b32.start.end [1/1] (short) %v381_v43, 128 }
 0x15a   : > { %v432_v4 = vpop.trf.xlu1  ;;  %v400_v11 = vpop.trf.xlu0 }
 0x15b   : > { %976 = vmatprep.mubr.msk.f32.mxu0 %vm448_vm8, %v400_v11  ;;  %1000 = vmatprep.mubr.msk.f32.mxu1 %vm448_vm8, %v432_v4 }
 0x15e   : > { %v433_v36 = vpop.trf.xlu1  ;;  %v401_v37 = vpop.trf.xlu0 }
 0x15f   : > { %977 = vmatmul.mubr.msk.f32.vlgmr.msra.gmra.mrb[0].mxu0 %vm448_vm8, %v401_v37  ;;  %1001 = vmatmul.mubr.msk.f32.vlgmr.msra.gmra.mrb[0].mxu1 %vm448_vm8, %v433_v36 }
 0x162   : > { %v434_v44 = vpop.trf.xlu1  ;;  %v402_v45 = vpop.trf.xlu0 }
 0x163   : > { %979 = vmatprep.mubr.msk.f32.mxu0 %vm448_vm8, %v402_v45  ;;  %1003 = vmatprep.mubr.msk.f32.mxu1 %vm448_vm8, %v434_v44 }
 0x166   : > { %v435_v46 = vpop.trf.xlu1  ;;  %v403_v47 = vpop.trf.xlu0 }
 0x167   : > { %980 = vmatmul.mubr.msk.f32.gmra.mrb[2].mxu0 %vm448_vm8, %v403_v47  ;;  %1004 = vmatmul.mubr.msk.f32.gmra.mrb[2].mxu1 %vm448_vm8, %v435_v46 }
 0x16a   : > { %v436_v48 = vpop.trf.xlu1  ;;  %v404_v49 = vpop.trf.xlu0 }
 0x16b   : > { %982 = vmatprep.mubr.msk.f32.mxu0 %vm448_vm8, %v404_v49  ;;  %1006 = vmatprep.mubr.msk.f32.mxu1 %vm448_vm8, %v436_v48 }
 0x16e   : > { %v437_v50 = vpop.trf.xlu1  ;;  %v405_v51 = vpop.trf.xlu0 }
 0x16f   : > { %983 = vmatmul.mubr.msk.f32.gmra.mrb[4].mxu0 %vm448_vm8, %v405_v51  ;;  %1007 = vmatmul.mubr.msk.f32.gmra.mrb[4].mxu1 %vm448_vm8, %v437_v50 }
 0x172   : > { %v438_v52 = vpop.trf.xlu1  ;;  %v406_v53 = vpop.trf.xlu0 }
 0x173   : > { %985 = vmatprep.mubr.msk.f32.mxu0 %vm448_vm8, %v406_v53  ;;  %1009 = vmatprep.mubr.msk.f32.mxu1 %vm448_vm8, %v438_v52 }
 0x176   : > { %v439_v54 = vpop.trf.xlu1  ;;  %v407_v55 = vpop.trf.xlu0 }
 0x177   : > { %986 = vmatmul.mubr.msk.f32.gmra.mrb[6].mxu0 %vm448_vm8, %v407_v55  ;;  %1010 = vmatmul.mubr.msk.f32.gmra.mrb[6].mxu1 %vm448_vm8, %v439_v54 }
 0x17a   : > { %v440_v56 = vpop.trf.xlu1  ;;  %v408_v57 = vpop.trf.xlu0 }
 0x17b   : > { %988 = vmatprep.mubr.msk.f32.mxu0 %vm448_vm8, %v408_v57  ;;  %1012 = vmatprep.mubr.msk.f32.mxu1 %vm448_vm8, %v440_v56 }
 0x17e   : > { %v441_v58 = vpop.trf.xlu1  ;;  %v409_v59 = vpop.trf.xlu0 }
 0x17f   : > { %989 = vmatmul.mubr.msk.f32.gmra.mrb[8].mxu0 %vm448_vm8, %v409_v59  ;;  %1013 = vmatmul.mubr.msk.f32.gmra.mrb[8].mxu1 %vm448_vm8, %v441_v58 }
 0x182   : > { %v442_v60 = vpop.trf.xlu1  ;;  %v410_v61 = vpop.trf.xlu0 }
 0x183   : > { %991 = vmatprep.mubr.msk.f32.mxu0 %vm448_vm8, %v410_v61  ;;  %1015 = vmatprep.mubr.msk.f32.mxu1 %vm448_vm8, %v442_v60 }
 0x186   : > { %v443_v62 = vpop.trf.xlu1  ;;  %v411_v63 = vpop.trf.xlu0 }
 0x187   : > { %992 = vmatmul.mubr.msk.f32.gmra.mrb[10].mxu0 %vm448_vm8, %v411_v63  ;;  %1016 = vmatmul.mubr.msk.f32.gmra.mrb[10].mxu1 %vm448_vm8, %v443_v62 }
 0x18a   : > { %v444_v0 = vpop.trf.xlu1  ;;  %v412_v1 = vpop.trf.xlu0 }
 0x18b   : > { %994 = vmatprep.mubr.msk.f32.mxu0 %vm448_vm8, %v412_v1  ;;  %1018 = vmatprep.mubr.msk.f32.mxu1 %vm448_vm8, %v444_v0 }
 0x18e   : > { %v445_v2 = vpop.trf.xlu1  ;;  %v413_v5 = vpop.trf.xlu0 }
 0x18f   : > { %995 = vmatmul.mubr.msk.f32.gmra.mrb[12].mxu0 %vm448_vm8, %v413_v5  ;;  %1019 = vmatmul.mubr.msk.f32.gmra.mrb[12].mxu1 %vm448_vm8, %v445_v2 }
 0x192   : > { %v446_v6 = vpop.trf.xlu1  ;;  %v414_v7 = vpop.trf.xlu0 }
 0x193   : > { %997 = vmatprep.mubr.msk.f32.mxu0 %vm448_vm8, %v414_v7  ;;  %1021 = vmatprep.mubr.msk.f32.mxu1 %vm448_vm8, %v446_v6 }
 0x196   : > { %v447_v8 = vpop.trf.xlu1  ;;  %v415_v9 = vpop.trf.xlu0 }
 0x197   : > { %998 = vmatmul.mubr.msk.f32.gmra.mrb[14].mxu0 %vm448_vm8, %v415_v9  ;;  %1022 = vmatmul.mubr.msk.f32.gmra.mrb[14].mxu1 %vm448_vm8, %v447_v8 }
 0x232   : > { %v978_v10 = vpop.f32.mrb[0].mxu0  ;;  %v1002_v13 = vpop.f32.mrb[0].mxu1 }
 0x233   : > { %772 = vst.msk [vmem:[%s1209_s28 + $0x8] sm:$0xff] %vm770_vm9, %v978_v10  ;;  %788 = vst.msk [vmem:[%s1209_s28 + $0x88] sm:$0xff] %vm770_vm9, %v1002_v13  ;;  %v611_v14 = vpop.f32.mrb[1].mxu0  ;;  %v691_v15 = vpop.f32.mrb[1].mxu1 }
 0x234   : > { %771 = vst.msk [vmem:[%s1209_s28] sm:$0xff] %vm770_vm9, %v611_v14  ;;  %787 = vst.msk [vmem:[%s1209_s28 + $0x80] sm:$0xff] %vm770_vm9, %v691_v15 }
 0x23a   : > { %v981_v16 = vpop.f32.mrb[2].mxu0  ;;  %v1005_v17 = vpop.f32.mrb[2].mxu1 }
 0x23b   : > { %774 = vst.msk [vmem:[%s1209_s28 + $0x18] sm:$0xff] %vm770_vm9, %v981_v16  ;;  %790 = vst.msk [vmem:[%s1209_s28 + $0x98] sm:$0xff] %vm770_vm9, %v1005_v17  ;;  %v621_v18 = vpop.f32.mrb[3].mxu0  ;;  %v701_v19 = vpop.f32.mrb[3].mxu1 }
 0x23c   : > { %773 = vst.msk [vmem:[%s1209_s28 + $0x10] sm:$0xff] %vm770_vm9, %v621_v18  ;;  %789 = vst.msk [vmem:[%s1209_s28 + $0x90] sm:$0xff] %vm770_vm9, %v701_v19 }
 0x242   : > { %v984_v20 = vpop.f32.mrb[4].mxu0  ;;  %v1008_v21 = vpop.f32.mrb[4].mxu1 }
 0x243   : > { %776 = vst.msk [vmem:[%s1209_s28 + $0x28] sm:$0xff] %vm770_vm9, %v984_v20  ;;  %792 = vst.msk [vmem:[%s1209_s28 + $0xa8] sm:$0xff] %vm770_vm9, %v1008_v21  ;;  %v631_v22 = vpop.f32.mrb[5].mxu0  ;;  %v711_v23 = vpop.f32.mrb[5].mxu1 }
 0x244   : > { %775 = vst.msk [vmem:[%s1209_s28 + $0x20] sm:$0xff] %vm770_vm9, %v631_v22  ;;  %791 = vst.msk [vmem:[%s1209_s28 + $0xa0] sm:$0xff] %vm770_vm9, %v711_v23 }
 0x24a   : > { %v987_v24 = vpop.f32.mrb[6].mxu0  ;;  %v1011_v25 = vpop.f32.mrb[6].mxu1 }
 0x24b   : > { %778 = vst.msk [vmem:[%s1209_s28 + $0x38] sm:$0xff] %vm770_vm9, %v987_v24  ;;  %794 = vst.msk [vmem:[%s1209_s28 + $0xb8] sm:$0xff] %vm770_vm9, %v1011_v25  ;;  %v641_v26 = vpop.f32.mrb[7].mxu0  ;;  %v721_v27 = vpop.f32.mrb[7].mxu1 }
 0x24c   : > { %777 = vst.msk [vmem:[%s1209_s28 + $0x30] sm:$0xff] %vm770_vm9, %v641_v26  ;;  %793 = vst.msk [vmem:[%s1209_s28 + $0xb0] sm:$0xff] %vm770_vm9, %v721_v27 }
 0x252   : > { %v990_v28 = vpop.f32.mrb[8].mxu0  ;;  %v1014_v29 = vpop.f32.mrb[8].mxu1 }
 0x253   : > { %780 = vst.msk [vmem:[%s1209_s28 + $0x48] sm:$0xff] %vm770_vm9, %v990_v28  ;;  %796 = vst.msk [vmem:[%s1209_s28 + $0xc8] sm:$0xff] %vm770_vm9, %v1014_v29  ;;  %v651_v30 = vpop.f32.mrb[9].mxu0  ;;  %v731_v31 = vpop.f32.mrb[9].mxu1 }
 0x254   : > { %779 = vst.msk [vmem:[%s1209_s28 + $0x40] sm:$0xff] %vm770_vm9, %v651_v30  ;;  %795 = vst.msk [vmem:[%s1209_s28 + $0xc0] sm:$0xff] %vm770_vm9, %v731_v31 }
 0x25a   : > { %v993_v32 = vpop.f32.mrb[10].mxu0  ;;  %v1017_v33 = vpop.f32.mrb[10].mxu1 }
 0x25b   : > { %782 = vst.msk [vmem:[%s1209_s28 + $0x58] sm:$0xff] %vm770_vm9, %v993_v32  ;;  %798 = vst.msk [vmem:[%s1209_s28 + $0xd8] sm:$0xff] %vm770_vm9, %v1017_v33  ;;  %v661_v3 = vpop.f32.mrb[11].mxu0  ;;  %v741_v34 = vpop.f32.mrb[11].mxu1 }
 0x25c   : > { %781 = vst.msk [vmem:[%s1209_s28 + $0x50] sm:$0xff] %vm770_vm9, %v661_v3  ;;  %797 = vst.msk [vmem:[%s1209_s28 + $0xd0] sm:$0xff] %vm770_vm9, %v741_v34 }
 0x262   : > { %v996_v35 = vpop.f32.mrb[12].mxu0  ;;  %v1020_v38 = vpop.f32.mrb[12].mxu1 }
 0x263   : > { %784 = vst.msk [vmem:[%s1209_s28 + $0x68] sm:$0xff] %vm770_vm9, %v996_v35  ;;  %800 = vst.msk [vmem:[%s1209_s28 + $0xe8] sm:$0xff] %vm770_vm9, %v1020_v38  ;;  %v671_v39 = vpop.f32.mrb[13].mxu0  ;;  %v751_v40 = vpop.f32.mrb[13].mxu1 }
 0x264   : > { %783 = vst.msk [vmem:[%s1209_s28 + $0x60] sm:$0xff] %vm770_vm9, %v671_v39  ;;  %799 = vst.msk [vmem:[%s1209_s28 + $0xe0] sm:$0xff] %vm770_vm9, %v751_v40 }
 0x26a   : > { %v999_v41 = vpop.f32.mrb[14].mxu0  ;;  %v1023_v42 = vpop.f32.mrb[14].mxu1 }
 0x26b   : > { %786 = vst.msk [vmem:[%s1209_s28 + $0x78] sm:$0xff] %vm770_vm9, %v999_v41  ;;  %802 = vst.msk [vmem:[%s1209_s28 + $0xf8] sm:$0xff] %vm770_vm9, %v1023_v42  ;;  %v681_v43 = vpop.f32.mrb[15].mxu0  ;;  %v761_v12 = vpop.f32.mrb[15].mxu1 }
 0x26c   : > { %785 = vst.msk [vmem:[%s1209_s28 + $0x70] sm:$0xff] %vm770_vm9, %v681_v43  ;;  %801 = vst.msk [vmem:[%s1209_s28 + $0xf0] sm:$0xff] %vm770_vm9, %v761_v12 }
 0x26d PF: > { %s13_s14 = sadd.s32 1, %s1084_s14   ;;  %s1288_s12 = smov %s1080_s13 }
 0x26e   : > { %p10_p6 = scmp.ge.s32.totalorder %s13_s14, 4   ;;  %s1289_s13 = smov %s1291_s15 }
 0x270   :  { %12 = sbr.rel (!%p10_p6) target bundleno = 2 (0x2), region = 65 }

</bundles_post_ra>
